<compile_context>
chip_gen: v7x
topology: tpu7x:2x2x1
jax: 0.10.0
libtpu: 0.0.40
codegen_flags: <defaults>
</compile_context>

<pallas_src>
import functools

import jax
import jax.numpy as jnp
from jax.experimental import pallas as pl
from jax.experimental.pallas import tpu as pltpu

D_PAD = 128   # lane-dense feature width (all layer widths <= 128 here)
B_SUB = 8     # sublane multiple for f32
TM_BIG = 512  # batch tile for realistic sizes (>= 85% of HBM roofline)


def _round_up(x: int, m: int) -> int:
    return ((x + m - 1) // m) * m


def _mlp_fused_kernel(x_ref, w_ref, b_ref, o_ref, *, n_layers: int):
    # x_ref: [tm, D_PAD]  f32   (padded input activations, one batch tile)
    # w_ref: [L, D_PAD, D_PAD] bf16 (stacked, zero-padded, pre-transposed weights)
    # b_ref: [L, D_PAD]   f32   (stacked, zero-padded biases)
    # o_ref: [tm, D_PAD]  f32   (padded output; valid region sliced by wrapper)
    h = x_ref[...].astype(jnp.float32)
    # Static (unrolled) loop over layers; n_layers is small and compile-time known.
    for layer in range(n_layers):
        # bf16 x bf16 -> f32 accumulate on the MXU.
        y = jnp.dot(h.astype(jnp.bfloat16), w_ref[layer],
                    preferred_element_type=jnp.float32)
        y = y + b_ref[layer:layer + 1, :]      # [1, D_PAD] broadcast, f32 on VPU
        if layer < n_layers - 1:
            y = jnp.tanh(y)                    # f32 tanh on EUP; last layer identity
        h = y
    o_ref[...] = h.astype(o_ref.dtype)


def mlp_pallas_call(x_pad, w_all, b_all, *, tm):
    """x_pad: [B_pad, D_PAD] f32, w_all: [L, D_PAD, D_PAD] bf16, b_all: [L, D_PAD] f32."""
    B_pad = x_pad.shape[0]
    L = w_all.shape[0]
    assert B_pad % tm == 0
    grid = (B_pad // tm,)
    kernel = functools.partial(_mlp_fused_kernel, n_layers=L)

    flops = 2 * L * B_pad * D_PAD * D_PAD
    transcendentals = (L - 1) * B_pad * D_PAD
    bytes_accessed = (x_pad.size * x_pad.dtype.itemsize
                      + w_all.size * w_all.dtype.itemsize
                      + b_all.size * b_all.dtype.itemsize
                      + B_pad * D_PAD * 4)

    return pl.pallas_call(
        kernel,
        out_shape=jax.ShapeDtypeStruct((B_pad, D_PAD), jnp.float32),
        grid_spec=pltpu.PrefetchScalarGridSpec(
            num_scalar_prefetch=0,
            grid=grid,
            in_specs=[
                # Batch tile of activations.
                pl.BlockSpec((tm, D_PAD), lambda i: (i, 0)),
                # Weights / biases: full-array, VMEM-resident across batch steps.
                pl.BlockSpec((L, D_PAD, D_PAD), lambda i: (0, 0, 0)),
                pl.BlockSpec((L, D_PAD), lambda i: (0, 0)),
            ],
            out_specs=pl.BlockSpec((tm, D_PAD), lambda i: (i, 0)),
        ),
        compiler_params=pltpu.CompilerParams(
            dimension_semantics=("parallel",),        # shard batch tiles across v7x's 2 TCs
            vmem_limit_bytes=32 * 1024 * 1024,        # explicit budget (fits v5e/v6e/v7x)
        ),
        cost_estimate=pl.CostEstimate(
            flops=flops,
            transcendentals=transcendentals,
            bytes_accessed=bytes_accessed,
        ),
    )(x_pad, w_all, b_all)


def init_linear_params(key, in_features, out_features, dtype=jnp.float32):
    """Mimics PyTorch nn.Linear init: U(-1/sqrt(fan_in), 1/sqrt(fan_in))."""
    kw, kb = jax.random.split(key)
    bound = 1.0 / jnp.sqrt(jnp.asarray(in_features, dtype))
    # Stored already transposed: [in_features, out_features]
    w_t = jax.random.uniform(kw, (in_features, out_features), dtype,
                             minval=-bound, maxval=bound)
    b = jax.random.uniform(kb, (out_features,), dtype, minval=-bound, maxval=bound)
    return w_t, b


def init_mlp_params(key, in_dim, hid_dim, out_dim, n_hid_layers):
    keys = jax.random.split(key, n_hid_layers + 2)
    params = {"f_in": init_linear_params(keys[0], in_dim, hid_dim)}
    params["layers"] = [
        init_linear_params(keys[1 + i], hid_dim, hid_dim)
        for i in range(n_hid_layers)
    ]
    params["f_out"] = init_linear_params(keys[-1], hid_dim, out_dim)
    return params


def build_fused_params(params, in_dim, hid_dim, out_dim, n_hid_layers):
    """Stack + zero-pad all layer weights/biases into lane-dense tensors (done once).

    Weights -> bf16 (MXU-native, half the VMEM/DMA bytes); exact-zero padding is
    preserved by the bf16 cast, so padded lanes stay exactly 0 through tanh.
    Biases -> packed 2-D f32 [L, D_PAD].
    """
    L = n_hid_layers + 2
    w_all = jnp.zeros((L, D_PAD, D_PAD), jnp.float32)
    b_all = jnp.zeros((L, D_PAD), jnp.float32)

    w_t, b = params["f_in"]
    w_all = w_all.at[0, :in_dim, :hid_dim].set(w_t)
    b_all = b_all.at[0, :hid_dim].set(b)
    for i, (w_t, b) in enumerate(params["layers"]):
        w_all = w_all.at[1 + i, :hid_dim, :hid_dim].set(w_t)
        b_all = b_all.at[1 + i, :hid_dim].set(b)
    w_t, b = params["f_out"]
    w_all = w_all.at[L - 1, :hid_dim, :out_dim].set(w_t)
    b_all = b_all.at[L - 1, :out_dim].set(b)
    return w_all.astype(jnp.bfloat16), b_all


@functools.partial(jax.jit, static_argnames=("in_dim", "out_dim"))
def mlp_forward(w_all, b_all, x, *, in_dim, out_dim):
    """x: [B, in_dim] -> [B, out_dim]; one fused Pallas kernel for the whole MLP."""
    B = x.shape[0]
    if B <= TM_BIG:
        B_pad = max(_round_up(B, B_SUB), B_SUB)
        tm = B_pad                       # single batch tile at small sizes
    else:
        B_pad = _round_up(B, TM_BIG)
        tm = TM_BIG                      # >=512-row tiles at realistic sizes
    # Single fused pad (no scatter / full-array materialization in the wrapper).
    x_pad = jnp.pad(x.astype(jnp.float32),
                    ((0, B_pad - B), (0, D_PAD - in_dim)))
    out_pad = mlp_pallas_call(x_pad, w_all, b_all, tm=tm)
    return out_pad[:B, :out_dim]


if __name__ == "__main__":
    in_dim, hid_dim, out_dim, n_hid_layers = 16, 32, 8, 2
    batch = 4

    key = jax.random.PRNGKey(0)
    k_params, k_x = jax.random.split(key)

    params = init_mlp_params(k_params, in_dim, hid_dim, out_dim, n_hid_layers)
    w_all, b_all = build_fused_params(params, in_dim, hid_dim, out_dim, n_hid_layers)
    x = jax.random.normal(k_x, (batch, in_dim), jnp.float32)

    out = mlp_forward(w_all, b_all, x, in_dim=in_dim, out_dim=out_dim)
    jax.block_until_ready(out)

    # Pure-JAX f32 reference of the same math (PyTorch MLP forward semantics).
    def ref_forward(params, x):
        w_t, b = params["f_in"]
        h = jnp.tanh(x @ w_t + b)
        for (w_t, b) in params["layers"]:
            h = jnp.tanh(h @ w_t + b)
        w_t, b = params["f_out"]
        return h @ w_t + b

    ref = ref_forward(params, x)
    assert out.shape == (batch, out_dim)
    # bf16 matmul inputs (f32 accumulate) vs f32 reference -> relaxed tolerance.
    assert jnp.allclose(out, ref, atol=2e-2, rtol=2e-2), (
        f"max abs err {jnp.max(jnp.abs(out - ref))}")

    print("KERNEL_OK")
</pallas_src>

<mosaic_0001>
module attributes {stable_mosaic.version = 11 : i64} {
  func.func @_mlp_fused_kernel(%arg0: i32, %arg1: memref<8x128xf32, #tpu.memory_space<vmem>>, %arg2: memref<4x128x128xbf16, #tpu.memory_space<vmem>>, %arg3: memref<4x128xf32, #tpu.memory_space<vmem>>, %arg4: memref<8x128xf32, #tpu.memory_space<vmem>>) attributes {dimension_semantics = [#tpu.dimension_semantics<parallel>], iteration_bounds = array<i64: 1>, scalar_prefetch = 0 : i64, scratch_operands = 0 : i64, tpu.core_type = #tpu.core_type<tc>, window_params = [{transform_indices = @transform_0, window_bounds = array<i64: 8, 128>}, {pipeline_mode = #tpu.pipeline_mode<synchronous>, transform_indices = @transform_1, window_bounds = array<i64: 4, 128, 128>}, {pipeline_mode = #tpu.pipeline_mode<synchronous>, transform_indices = @transform_2, window_bounds = array<i64: 4, 128>}, {transform_indices = @transform_3, window_bounds = array<i64: 8, 128>}]} {
    %c0 = arith.constant 0 : index
    %c0_0 = arith.constant 0 : index
    %0 = vector.load %arg1[%c0, %c0_0] : memref<8x128xf32, #tpu.memory_space<vmem>>, vector<8x128xf32>
    %1 = arith.truncf %0 : vector<8x128xf32> to vector<8x128xbf16>
    %c0_1 = arith.constant 0 : index
    %c0_2 = arith.constant 0 : index
    %c0_3 = arith.constant 0 : index
    %2 = vector.load %arg2[%c0_1, %c0_2, %c0_3] : memref<4x128x128xbf16, #tpu.memory_space<vmem>>, vector<1x128x128xbf16>
    %3 = vector.shape_cast %2 : vector<1x128x128xbf16> to vector<128x128xbf16>
    %cst = arith.constant dense<0.000000e+00> : vector<8x128xf32>
    %4 = tpu.matmul %1, %3, %cst {dimension_numbers = #tpu.dot_dimension_numbers<[1], [0], [0], [1], [0, 0, 1, 1], [], []>} : vector<8x128xbf16>, vector<128x128xbf16>, vector<8x128xf32> -> vector<8x128xf32>
    %c0_4 = arith.constant 0 : index
    %c0_5 = arith.constant 0 : index
    %5 = vector.load %arg3[%c0_4, %c0_5] : memref<4x128xf32, #tpu.memory_space<vmem>>, vector<1x128xf32>
    %6 = vector.broadcast %5 : vector<1x128xf32> to vector<8x128xf32>
    %7 = arith.addf %4, %6 : vector<8x128xf32>
    %8 = math.tanh %7 : vector<8x128xf32>
    %9 = arith.truncf %8 : vector<8x128xf32> to vector<8x128xbf16>
    %c1 = arith.constant 1 : index
    %c0_6 = arith.constant 0 : index
    %c0_7 = arith.constant 0 : index
    %10 = vector.load %arg2[%c1, %c0_6, %c0_7] : memref<4x128x128xbf16, #tpu.memory_space<vmem>>, vector<1x128x128xbf16>
    %11 = vector.shape_cast %10 : vector<1x128x128xbf16> to vector<128x128xbf16>
    %cst_8 = arith.constant dense<0.000000e+00> : vector<8x128xf32>
    %12 = tpu.matmul %9, %11, %cst_8 {dimension_numbers = #tpu.dot_dimension_numbers<[1], [0], [0], [1], [0, 0, 1, 1], [], []>} : vector<8x128xbf16>, vector<128x128xbf16>, vector<8x128xf32> -> vector<8x128xf32>
    %c1_9 = arith.constant 1 : index
    %c0_10 = arith.constant 0 : index
    %13 = vector.load %arg3[%c1_9, %c0_10] : memref<4x128xf32, #tpu.memory_space<vmem>>, vector<1x128xf32>
    %14 = vector.broadcast %13 : vector<1x128xf32> to vector<8x128xf32>
    %15 = arith.addf %12, %14 : vector<8x128xf32>
    %16 = math.tanh %15 : vector<8x128xf32>
    %17 = arith.truncf %16 : vector<8x128xf32> to vector<8x128xbf16>
    %c2 = arith.constant 2 : index
    %c0_11 = arith.constant 0 : index
    %c0_12 = arith.constant 0 : index
    %18 = vector.load %arg2[%c2, %c0_11, %c0_12] : memref<4x128x128xbf16, #tpu.memory_space<vmem>>, vector<1x128x128xbf16>
    %19 = vector.shape_cast %18 : vector<1x128x128xbf16> to vector<128x128xbf16>
    %cst_13 = arith.constant dense<0.000000e+00> : vector<8x128xf32>
    %20 = tpu.matmul %17, %19, %cst_13 {dimension_numbers = #tpu.dot_dimension_numbers<[1], [0], [0], [1], [0, 0, 1, 1], [], []>} : vector<8x128xbf16>, vector<128x128xbf16>, vector<8x128xf32> -> vector<8x128xf32>
    %c2_14 = arith.constant 2 : index
    %c0_15 = arith.constant 0 : index
    %21 = vector.load %arg3[%c2_14, %c0_15] : memref<4x128xf32, #tpu.memory_space<vmem>>, vector<1x128xf32>
    %22 = vector.broadcast %21 : vector<1x128xf32> to vector<8x128xf32>
    %23 = arith.addf %20, %22 : vector<8x128xf32>
    %24 = math.tanh %23 : vector<8x128xf32>
    %25 = arith.truncf %24 : vector<8x128xf32> to vector<8x128xbf16>
    %c3 = arith.constant 3 : index
    %c0_16 = arith.constant 0 : index
    %c0_17 = arith.constant 0 : index
    %26 = vector.load %arg2[%c3, %c0_16, %c0_17] : memref<4x128x128xbf16, #tpu.memory_space<vmem>>, vector<1x128x128xbf16>
    %27 = vector.shape_cast %26 : vector<1x128x128xbf16> to vector<128x128xbf16>
    %cst_18 = arith.constant dense<0.000000e+00> : vector<8x128xf32>
    %28 = tpu.matmul %25, %27, %cst_18 {dimension_numbers = #tpu.dot_dimension_numbers<[1], [0], [0], [1], [0, 0, 1, 1], [], []>} : vector<8x128xbf16>, vector<128x128xbf16>, vector<8x128xf32> -> vector<8x128xf32>
    %c3_19 = arith.constant 3 : index
    %c0_20 = arith.constant 0 : index
    %29 = vector.load %arg3[%c3_19, %c0_20] : memref<4x128xf32, #tpu.memory_space<vmem>>, vector<1x128xf32>
    %30 = vector.broadcast %29 : vector<1x128xf32> to vector<8x128xf32>
    %31 = arith.addf %28, %30 : vector<8x128xf32>
    %c0_21 = arith.constant 0 : index
    %c0_22 = arith.constant 0 : index
    %32 = vector.load %arg4[%c0_21, %c0_22] : memref<8x128xf32, #tpu.memory_space<vmem>>, vector<8x128xf32>
    tpu.vector_store %arg4[%c0_21, %c0_22], %31 {strides = array<i32>} : memref<8x128xf32, #tpu.memory_space<vmem>>, vector<8x128xf32>,
    return
  }
  func.func @transform_0(%arg0: i32) -> (i32, i32) {
    %c0_i32 = arith.constant 0 : i32
    %c0_i32_0 = arith.constant 0 : i32
    return %arg0, %c0_i32 : i32, i32
  }
  func.func @transform_1(%arg0: i32) -> (i32, i32, i32) {
    %c0_i32 = arith.constant 0 : i32
    %c0_i32_0 = arith.constant 0 : i32
    %c0_i32_1 = arith.constant 0 : i32
    %c0_i32_2 = arith.constant 0 : i32
    return %c0_i32, %c0_i32_0, %c0_i32_1 : i32, i32, i32
  }
  func.func @transform_2(%arg0: i32) -> (i32, i32) {
    %c0_i32 = arith.constant 0 : i32
    %c0_i32_0 = arith.constant 0 : i32
    %c0_i32_1 = arith.constant 0 : i32
    return %c0_i32, %c0_i32_0 : i32, i32
  }
  func.func @transform_3(%arg0: i32) -> (i32, i32) {
    %c0_i32 = arith.constant 0 : i32
    %c0_i32_0 = arith.constant 0 : i32
    return %arg0, %c0_i32 : i32, i32
  }
}

</mosaic_0001>

<bundles_post_ra>
// kernel: mlp_forward.1
= control target key start
LH: loop header
LB: loop body
LE: loop exit
PB: predicated region body
PF: predicated region fallthrough
CT: control target
= control target key end

     0   :  { %8 = vsyncpa [#allocation3], 0  ;;  %s701_s12 = smov [#allocation2]   ;;  %s796_s0 = inlined_call_operand.vmem [shape: f32[8,128], index: 0, kind: input, shape index: {}]   ;;  %s797_s1 = inlined_call_operand.hbm [shape: bf16[4,128,128], index: 1, kind: input, shape index: {}]   ;;  %s798_s2 = inlined_call_operand.vmem [shape: f32[4,128], index: 2, kind: input, shape index: {}]   ;;  %s799_s3 = inlined_call_operand.vmem [shape: f32[8,128], index: 3, kind: output, shape index: {}]  }
   0x1   :  { %s16_s13 = sshll.u32 %s701_s12, 4  ;;  %s677_s16 = scalar_lea.hbm %s797_s1, 4096  ;;  %s17_s13 = int_to_ptr.vmem [resolvable:$true] %s16_s13 }
   0x2   :  { %p678_p0 = scmp.ne.s32.totalorder %s797_s1, %s677_s16  ;;  %p681_p1 = scmp.lt.u32.totalorder %s677_s16, %s797_s1 }
   0x4   :  { %p683_p2 = pnand %p681_p1, %p678_p0 }
   0x6   :  { %686 = shalt.err (!%p683_p2)
}
   0x7   :  { %s687_s21 = scalar_lea.vmem %s17_s13, 4096  ;;  %p692_p4 = scmp.lt.s32.totalorder %s17_s13, %s17_s13 }
   0x8   :  { %p688_p3 = scmp.ne.s32.totalorder %s17_s13, %s687_s21  ;;  %p693_p5 = scmp.lt.s32.totalorder %s687_s21, %s687_s21 }
   0xa   :  { %p694_p6 = por %p693_p5, %p692_p4 }
   0xc   :  { %p695_p7 = pnand %p694_p6, %p688_p3 }
   0xe   :  { %698 = shalt.err (!%p695_p7)
}
   0xf   :  { %s702_s22 = smov 64   ;;  %s703_s23 = smov 4  }
  0x10   :  { %22 = dma.hbm_to_vmem [thread:$0]  %s797_s1, 4096, %s17_s13, [#allocation3], %s702_s22, %s702_s22, %s703_s23  }
  0x11   :  { %699 = dma.done.wait [#allocation3], 4096  }
  0x12   :  { %700 = vsyncadd [#allocation3], 4294963200  ;;  %v704_v0 = vmov 0.0   ;;  %vm705_vm0 = vmmov 0   ;;  %v639_v1 = vld [vmem:[#allocation2] sm:$0xff]   ;;  %v640_v2 = vld [vmem:[#allocation2 + $0x8] sm:$0xff]  }
  0x13   :  { %554 = vmatprep.subr.bf16.mxu0 %v704_v0  ;;  %570 = vmatprep.mubr.msk.bf16.mxu0 %vm705_vm0, %v704_v0  ;;  %v641_v3 = vld [vmem:[#allocation2 + $0x10] sm:$0xff]   ;;  %v647_v4 = vld [vmem:[#allocation2 + $0x40] sm:$0xff]   ;;  %v642_v5 = vld [vmem:[#allocation2 + $0x18] sm:$0xff]  }
  0x14   :  { %574 = vmatprep.subr.bf16.mxu1 %v704_v0  ;;  %590 = vmatprep.mubr.msk.bf16.mxu1 %vm705_vm0, %v704_v0  ;;  %v648_v6 = vld [vmem:[#allocation2 + $0x48] sm:$0xff]   ;;  %v643_v7 = vld [vmem:[#allocation2 + $0x20] sm:$0xff]   ;;  %v649_v8 = vld [vmem:[#allocation2 + $0x50] sm:$0xff]  }
  0x15   :  { %555 = vmatpush3.bf16.msra.mxu0 %v639_v1  ;;  %575 = vmatpush3.bf16.msra.mxu1 %v647_v4  ;;  %v644_v9 = vld [vmem:[#allocation2 + $0x28] sm:$0xff]   ;;  %v650_v10 = vld [vmem:[#allocation2 + $0x58] sm:$0xff]   ;;  %v645_v11 = vld [vmem:[#allocation2 + $0x30] sm:$0xff]  }
  0x16   :  { %556 = vmatprep.subr.bf16.mxu0 %v704_v0  ;;  %576 = vmatprep.subr.bf16.mxu1 %v704_v0  ;;  %v646_v12 = vld [vmem:[#allocation2 + $0x38] sm:$0xff]   ;;  %v29_v13 = vld [vmem:[%s796_s0] sm:$0xff]  ;;  %v652_v16 = vld [vmem:[#allocation2 + $0x68] sm:$0xff]  }
  0x17   :  { %v30_v14 = vpack.c.bf16 %v29_v13, %v29_v13  ;;  %v651_v15 = vld [vmem:[#allocation2 + $0x60] sm:$0xff]   ;;  %v653_v17 = vld [vmem:[#allocation2 + $0x70] sm:$0xff]   ;;  %v654_v18 = vld [vmem:[#allocation2 + $0x78] sm:$0xff]  }
  0x18   :  { %v655_v19 = vld [vmem:[#allocation2 + $0x80] sm:$0xff]   ;;  %v656_v20 = vld [vmem:[#allocation2 + $0x88] sm:$0xff]   ;;  %v657_v21 = vld [vmem:[#allocation2 + $0x90] sm:$0xff]  }
  0x19   :  { %557 = vmatpush3.bf16.msra.mxu0 %v640_v2  ;;  %577 = vmatpush3.bf16.msra.mxu1 %v648_v6  ;;  %v658_v22 = vld [vmem:[#allocation2 + $0x98] sm:$0xff]   ;;  %v482_v23 = vld [vmem:[%s798_s2] ss:$0 sm:$0xff]  ;;  %v660_v32 = vld [vmem:[#allocation2 + $0xa8] sm:$0xff]  }
  0x1a   :  { %558 = vmatprep.subr.bf16.mxu0 %v704_v0  ;;  %578 = vmatprep.subr.bf16.mxu1 %v704_v0  ;;  %v659_v31 = vld [vmem:[#allocation2 + $0xa0] sm:$0xff]   ;;  %v661_v33 = vld [vmem:[#allocation2 + $0xb0] sm:$0xff]   ;;  %v662_v34 = vld [vmem:[#allocation2 + $0xb8] sm:$0xff]  }
  0x1b   :  { %v663_v35 = vld [vmem:[#allocation2 + $0xc0] sm:$0xff]   ;;  %v664_v36 = vld [vmem:[#allocation2 + $0xc8] sm:$0xff]   ;;  %v665_v37 = vld [vmem:[#allocation2 + $0xd0] sm:$0xff]  }
  0x1c   :  { %v666_v38 = vld [vmem:[#allocation2 + $0xd8] sm:$0xff]   ;;  %v491_v39 = vld [vmem:[%s798_s2 + $0x1] ss:$0 sm:$0xff]  ;;  %v668_v48 = vld [vmem:[#allocation2 + $0xe8] sm:$0xff]  }
  0x1d   :  { %559 = vmatpush3.bf16.msra.mxu0 %v641_v3  ;;  %579 = vmatpush3.bf16.msra.mxu1 %v649_v8  ;;  %v667_v47 = vld [vmem:[#allocation2 + $0xe0] sm:$0xff]   ;;  %v669_v49 = vld [vmem:[#allocation2 + $0xf0] sm:$0xff]   ;;  %v670_v50 = vld [vmem:[#allocation2 + $0xf8] sm:$0xff]  }
  0x1e   :  { %560 = vmatprep.subr.bf16.mxu0 %v704_v0  ;;  %580 = vmatprep.subr.bf16.mxu1 %v704_v0  ;;  %v500_v51 = vld [vmem:[%s798_s2 + $0x2] ss:$0 sm:$0xff]  ;;  %v509_v59 = vld [vmem:[%s798_s2 + $0x3] ss:$0 sm:$0xff] }
  0x21   :  { %561 = vmatpush3.bf16.msra.mxu0 %v642_v5  ;;  %581 = vmatpush3.bf16.msra.mxu1 %v650_v10 }
  0x22   :  { %562 = vmatprep.subr.bf16.mxu0 %v704_v0  ;;  %582 = vmatprep.subr.bf16.mxu1 %v704_v0 }
  0x25   :  { %563 = vmatpush3.bf16.msra.mxu0 %v643_v7  ;;  %583 = vmatpush3.bf16.msra.mxu1 %v651_v15 }
  0x26   :  { %564 = vmatprep.subr.bf16.mxu0 %v704_v0  ;;  %584 = vmatprep.subr.bf16.mxu1 %v704_v0 }
  0x29   :  { %565 = vmatpush3.bf16.msra.mxu0 %v644_v9  ;;  %585 = vmatpush3.bf16.msra.mxu1 %v652_v16 }
  0x2a   :  { %566 = vmatprep.subr.bf16.mxu0 %v704_v0  ;;  %586 = vmatprep.subr.bf16.mxu1 %v704_v0 }
  0x2d   :  { %567 = vmatpush3.bf16.msra.mxu0 %v645_v11  ;;  %587 = vmatpush3.bf16.msra.mxu1 %v653_v17 }
  0x2e   :  { %568 = vmatprep.subr.bf16.mxu0 %v704_v0  ;;  %588 = vmatprep.subr.bf16.mxu1 %v704_v0 }
  0x31   :  { %569 = vmatpush3.bf16.msra.mxu0 %v646_v12  ;;  %589 = vmatpush3.bf16.msra.mxu1 %v654_v18 }
  0x32   :  { %594 = vmatprep.subr.bf16.mxu0 %v704_v0  ;;  %614 = vmatprep.subr.bf16.mxu1 %v704_v0 }
  0x34   :  { %571 = vmatmul.mubr.bf16.vlgmr.msra.gmra.mrb[0].mxu0 %v30_v14 }
  0x35   :  { %610 = vmatprep.mubr.msk.bf16.mxu0 %vm705_vm0, %v704_v0  ;;  %595 = vmatpush3.bf16.msra.mxu0 %v655_v19 }
  0x36   :  { %596 = vmatprep.subr.bf16.mxu0 %v704_v0 }
  0x39   :  { %597 = vmatpush3.bf16.msra.mxu0 %v656_v20 }
  0x3a   :  { %598 = vmatprep.subr.bf16.mxu0 %v704_v0 }
  0x3d   :  { %599 = vmatpush3.bf16.msra.mxu0 %v657_v21 }
  0x3e   :  { %600 = vmatprep.subr.bf16.mxu0 %v704_v0 }
  0x41   :  { %601 = vmatpush3.bf16.msra.mxu0 %v658_v22 }
  0x42   :  { %602 = vmatprep.subr.bf16.mxu0 %v704_v0 }
  0x45   :  { %603 = vmatpush3.bf16.msra.mxu0 %v659_v31 }
  0x46   :  { %604 = vmatprep.subr.bf16.mxu0 %v704_v0 }
  0x49   :  { %605 = vmatpush3.bf16.msra.mxu0 %v660_v32 }
  0x4a   :  { %606 = vmatprep.subr.bf16.mxu0 %v704_v0 }
  0x4d   :  { %607 = vmatpush3.bf16.msra.mxu0 %v661_v33 }
  0x4e   :  { %608 = vmatprep.subr.bf16.mxu0 %v704_v0 }
  0x51   :  { %609 = vmatpush3.bf16.msra.mxu0 %v662_v34 }
 0x107   :  { %v134_v24 = vpop.f32.mrb[0].mxu0 }
 0x108   :  { %v135_v25 = vadd.f32 %v482_v23, %v134_v24  ;;  %v572_v26 = vpop.f32.mrb[1].mxu0 }
 0x109   :  { %v137_v27 = vpop.f32.mrb[2].mxu0 }
 0x10a   :  { %671 = vtanh.f32 %v135_v25  ;;  %v573_v28 = vpop.f32.mrb[3].mxu0 }
 0x114   :  { %v672_v29 = vpop.eup %671 }
 0x115   :  { %v141_v30 = vpack.c.bf16 %v672_v29, %v672_v29 }
 0x117   :  { %591 = vmatmul.mubr.bf16.vlgmr.msra.gmra.mrb[0].mxu1 %v141_v30 }
 0x118   :  { %630 = vmatprep.mubr.msk.bf16.mxu1 %vm705_vm0, %v704_v0  ;;  %615 = vmatpush3.bf16.msra.mxu1 %v663_v35 }
 0x119   :  { %616 = vmatprep.subr.bf16.mxu1 %v704_v0 }
 0x11c   :  { %617 = vmatpush3.bf16.msra.mxu1 %v664_v36 }
 0x11d   :  { %618 = vmatprep.subr.bf16.mxu1 %v704_v0 }
 0x120   :  { %619 = vmatpush3.bf16.msra.mxu1 %v665_v37 }
 0x121   :  { %620 = vmatprep.subr.bf16.mxu1 %v704_v0 }
 0x124   :  { %621 = vmatpush3.bf16.msra.mxu1 %v666_v38 }
 0x125   :  { %622 = vmatprep.subr.bf16.mxu1 %v704_v0 }
 0x128   :  { %623 = vmatpush3.bf16.msra.mxu1 %v667_v47 }
 0x129   :  { %624 = vmatprep.subr.bf16.mxu1 %v704_v0 }
 0x12c   :  { %625 = vmatpush3.bf16.msra.mxu1 %v668_v48 }
 0x12d   :  { %626 = vmatprep.subr.bf16.mxu1 %v704_v0 }
 0x130   :  { %627 = vmatpush3.bf16.msra.mxu1 %v669_v49 }
 0x131   :  { %628 = vmatprep.subr.bf16.mxu1 %v704_v0 }
 0x134   :  { %629 = vmatpush3.bf16.msra.mxu1 %v670_v50 }
 0x1ea   :  { %v246_v40 = vpop.f32.mrb[0].mxu1 }
 0x1eb   :  { %v247_v41 = vadd.f32 %v491_v39, %v246_v40  ;;  %v592_v42 = vpop.f32.mrb[1].mxu1 }
 0x1ec   :  { %v249_v43 = vpop.f32.mrb[2].mxu1 }
 0x1ed   :  { %673 = vtanh.f32 %v247_v41  ;;  %v593_v44 = vpop.f32.mrb[3].mxu1 }
 0x1f7   :  { %v674_v45 = vpop.eup %673 }
 0x1f8   :  { %v253_v46 = vpack.c.bf16 %v674_v45, %v674_v45 }
 0x1fa   :  { %611 = vmatmul.mubr.bf16.vlgmr.msra.gmra.mrb[4].mxu0 %v253_v46 }
 0x2cd   :  { %v358_v52 = vpop.f32.mrb[4].mxu0 }
 0x2ce   :  { %v359_v53 = vadd.f32 %v500_v51, %v358_v52  ;;  %v612_v54 = vpop.f32.mrb[5].mxu0 }
 0x2cf   :  { %v361_v55 = vpop.f32.mrb[6].mxu0 }
 0x2d0   :  { %675 = vtanh.f32 %v359_v53  ;;  %v613_v56 = vpop.f32.mrb[7].mxu0 }
 0x2da   :  { %v676_v57 = vpop.eup %675 }
 0x2db   :  { %v365_v58 = vpack.c.bf16 %v676_v57, %v676_v57 }
 0x2dd   :  { %631 = vmatmul.mubr.bf16.vlgmr.msra.gmra.mrb[4].mxu1 %v365_v58 }
 0x3b0   :  { %v470_v60 = vpop.f32.mrb[4].mxu1 }
 0x3b1   :  { %v471_v61 = vadd.f32 %v509_v59, %v470_v60  ;;  %v632_v62 = vpop.f32.mrb[5].mxu1 }
 0x3b2   :  { %v473_v63 = vpop.f32.mrb[6].mxu1 }
 0x3b3   :  { %476 = vst [vmem:[%s799_s3] sm:$0xff] %v471_v61  ;;  %v633_v0 = vpop.f32.mrb[7].mxu1 }
 0x3b4   :  { %481 = vsyncpa [#allocation3], 1 }

</bundles_post_ra>
